<compile_context>
chip_gen: v7x
topology: tpu7x:2x2x1
jax: 0.10.0
libtpu: 0.0.40
codegen_flags: <defaults>
</compile_context>

<pallas_src>
import functools

import jax
import jax.numpy as jnp
from jax import lax
from jax.experimental import pallas as pl
from jax.experimental.pallas import tpu as pltpu

_MIB = 1 << 20


def _round_up(v, m):
    return ((v + m - 1) // m) * m


def _cdiv(a, b):
    return -(-a // b)


@functools.lru_cache(maxsize=None)
def _tpu_config():
    """Returns (vmem_capacity_bytes, batch_shards) with conservative fallbacks."""
    vmem_bytes = 64 * _MIB          # v7x per-TensorCore floor (smallest of all gens)
    shards = 1                      # v5e / v6e: single TensorCore
    try:
        vmem_bytes = int(pltpu.get_tpu_info().vmem_capacity_bytes)
    except Exception:
        pass
    try:
        kind = jax.devices()[0].device_kind.lower()
        if "v7" in kind or "7x" in kind:
            shards = 2              # two TensorCores per chip on v7x
    except Exception:
        pass
    return vmem_bytes, shards


def _group_loss_kernel(num_groups, n_total, tn, tiles_per_shard, needs_mask,
                       pa_ref, x_ref, gram_out_ref, p_norm_ref, gram_acc_ref):
    """One (shard, batch-tile) grid step.

    pa_ref       : (C, G_PAD)       raw parameter, zero-padded group axis
    x_ref        : (C, TN)          one batch tile (native dtype)
    gram_out_ref : (1, G_PAD, G_PAD) per-shard Gram output
    p_norm_ref   : (C, G_PAD) f32   VMEM scratch (softmax / column-normalized)
    gram_acc_ref : (G_PAD, G_PAD) f32 VMEM scratch (running Gram accumulator)
    """
    s = pl.program_id(0)
    j = pl.program_id(1)

    # ---- init: softmax + column normalization, once per shard -------------
    @pl.when(j == 0)
    def _init():
        pa = pa_ref[...].astype(jnp.float32)                      # (C, G_PAD)
        lane = lax.broadcasted_iota(jnp.int32, pa.shape, 1)
        valid = lane < num_groups
        m = jnp.max(jnp.where(valid, pa, -jnp.inf), axis=1, keepdims=True)
        e = jnp.where(valid, jnp.exp(pa - m), 0.0)
        p = e / jnp.sum(e, axis=1, keepdims=True)                 # softmax (real groups)
        col = jnp.sum(p, axis=0, keepdims=True)                   # (1, G_PAD)
        col = jnp.where(col > 0.0, col, 1.0)                      # pad cols: avoid 0/0
        p_norm_ref[...] = p / col                                 # padded cols stay 0
        gram_acc_ref[...] = jnp.zeros_like(gram_acc_ref)

    # ---- steady state: one batch tile --------------------------------------
    x = x_ref[...].astype(jnp.float32)                            # (C, TN)
    pn = p_norm_ref[...]                                          # (C, G_PAD)
    # gw[g, n] = sum_c p_norm[c, g] * x[c, n]
    gw = lax.dot_general(pn, x, (((0,), (0,)), ((), ())),
                         preferred_element_type=jnp.float32)      # (G_PAD, TN)
    if needs_mask:
        # Zero the lanes past the true batch size (partial tail tile, or a
        # nominally out-of-range tile that the index_map clamped).
        start = (s * tiles_per_shard + j) * tn
        lane = lax.broadcasted_iota(jnp.int32, gw.shape, 1)
        gw = jnp.where(lane < n_total - start, gw, 0.0)
    # Gram accumulate over the batch (lane) axis: M += gw @ gw^T
    gram_acc_ref[...] += lax.dot_general(
        gw, gw, (((1,), (1,)), ((), ())),
        preferred_element_type=jnp.float32)                       # (G_PAD, G_PAD)

    # ---- finalize: single writeback per shard ------------------------------
    @pl.when(j == pl.num_programs(1) - 1)
    def _finalize():
        gram_out_ref[0] = gram_acc_ref[...]


@functools.partial(jax.jit, static_argnames=("max_tile_cols",))
def group_assignment_loss(x, pa, *, max_tile_cols=None):
    """x: (num_classes, batch); pa: (num_classes, num_groups).

    max_tile_cols: optional cap on the batch-tile width (testing hook).
    """
    c, n = x.shape
    c2, g = pa.shape
    if c != c2:
        raise ValueError("x and pa must share the class axis")
    g_pad = max(8, _round_up(g, 8))

    vmem_bytes, num_shards = _tpu_config()

    # ---- batch tile: lane-aligned, sized from the per-gen VMEM capacity ----
    # Target ~8 MiB of f32 footprint per x buffer (double-buffered), capped at
    # vmem/8 so v7x's 64 MiB per-core VMEM keeps full buffering.
    x_tile_budget = min(8 * _MIB, max(2 * _MIB, vmem_bytes // 8))
    tn_cap = max(128, (x_tile_budget // (c * 4)) // 128 * 128)
    if max_tile_cols is not None:
        tn_cap = max(128, min(tn_cap, _round_up(max_tile_cols, 128)))
    # NOTE: for very large num_classes (C*128*4 exceeding the budget) a
    # C-tiling grid axis accumulating gw before the Gram matmul would be the
    # next step; not needed at these shapes.

    per_shard = _cdiv(n, num_shards)
    tn = max(128, min(tn_cap, _round_up(per_shard, 128)))
    total_tiles = _cdiv(n, tn)
    num_shards = max(1, min(num_shards, total_tiles))
    tiles_per_shard = _cdiv(total_tiles, num_shards)
    needs_mask = (num_shards * tiles_per_shard * tn != n)
    last_tile = total_tiles - 1

    # pa is tiny: zero-pad the group axis to 8 sublanes (masked in-kernel).
    pa_p = jnp.pad(pa, ((0, 0), (0, g_pad - g)))

    if num_shards * tiles_per_shard > total_tiles:
        # Clamp nominally out-of-range tiles onto the last real tile; their
        # contribution is zeroed by the in-kernel lane mask.
        x_index_map = lambda s, j, _t=tiles_per_shard, _l=last_tile: (
            0, jnp.minimum(s * _t + j, _l))
    else:
        x_index_map = lambda s, j, _t=tiles_per_shard: (0, s * _t + j)

    # ---- VMEM budget: explicit limit so the scoped default never caps us ---
    x_bytes = jnp.dtype(x.dtype).itemsize
    x_buf = c * tn * x_bytes
    vmem_need = (2 * x_buf                     # double-buffered x stream
                 + c * tn * 4                  # f32 cast of the live tile
                 + 2 * g_pad * tn * 4          # gw (+ possible transposed copy)
                 + 2 * c * g_pad * 4           # resident pa block buffers
                 + c * g_pad * 4               # p_norm scratch
                 + 4 * g_pad * g_pad * 4       # Gram scratch + output buffers
                 + 8 * _MIB)                   # compiler temporaries / slack
    vmem_limit = int(min(max(vmem_need, 32 * _MIB), vmem_bytes * 3 // 4))

    tiles_total = num_shards * tiles_per_shard
    cost = pl.CostEstimate(
        flops=2 * (c * g_pad + g_pad * g_pad) * tn * tiles_total,
        transcendentals=num_shards * c * g_pad,
        bytes_accessed=(x_bytes * c * n + 4 * c * g_pad
                        + 4 * num_shards * g_pad * g_pad),
    )

    kernel = functools.partial(_group_loss_kernel, g, n, tn, tiles_per_shard,
                               needs_mask)

    grams = pl.pallas_call(
        kernel,
        out_shape=jax.ShapeDtypeStruct((num_shards, g_pad, g_pad), jnp.float32),
        grid=(num_shards, tiles_per_shard),
        in_specs=[
            # pa: tiny, same resident block every step
            pl.BlockSpec((c, g_pad), lambda s, j: (0, 0)),
            # x: stream lane-aligned batch tiles straight from HBM
            pl.BlockSpec((c, tn), x_index_map),
        ],
        out_specs=pl.BlockSpec((1, g_pad, g_pad), lambda s, j: (s, 0, 0)),
        scratch_shapes=[
            pltpu.VMEM((c, g_pad), jnp.float32),      # normalized softmax (persistent)
            pltpu.VMEM((g_pad, g_pad), jnp.float32),  # Gram accumulator
        ],
        compiler_params=pltpu.CompilerParams(
            dimension_semantics=("parallel", "arbitrary"),
            vmem_limit_bytes=vmem_limit),
        cost_estimate=cost,
    )(pa_p, x)

    # Tiny final reduce: sum shards, then the strict upper triangle (padded
    # rows/cols are exactly zero) -- exactly the PyTorch pairwise sums.
    gram = jnp.sum(grams, axis=0)                                  # (G_PAD, G_PAD)
    upper = jnp.triu(jnp.ones((g_pad, g_pad), dtype=bool), k=1)
    pair_sum = jnp.sum(jnp.where(upper, gram, 0.0))
    num_pairs = g * (g - 1) // 2    # g == 1 -> 0/0 = NaN, like torch.mean of empty
    return pair_sum / jnp.float32(num_pairs)


def _reference_loss(x, pa):
    """Pure-JAX transcription of the PyTorch forward (for validation)."""
    p = jax.nn.softmax(pa, axis=1)                       # (C, G)
    gw = (x.T @ p) / jnp.sum(p, axis=0)                  # (N, G)
    gw = gw.T                                            # (G, N)
    g = pa.shape[1]
    pairs = [jnp.sum(gw[i] * gw[j])
             for i in range(g) for j in range(g) if i < j]
    return jnp.mean(jnp.stack(pairs))


if __name__ == "__main__":
    key = jax.random.PRNGKey(0)
    kx, kp, kx2, kp2 = jax.random.split(key, 4)

    # Shapes implied by the module: x is (num_classes, batch).
    num_classes, num_groups, batch = 32, 4, 16
    x = jax.random.normal(kx, (num_classes, batch), dtype=jnp.float32)
    pa = 0.01 * jax.random.normal(kp, (num_classes, num_groups),
                                  dtype=jnp.float32)

    loss = jax.block_until_ready(group_assignment_loss(x, pa))
    ref = jax.block_until_ready(_reference_loss(x, pa))
    assert jnp.allclose(loss, ref, rtol=1e-5, atol=1e-5), (loss, ref)

    # Second (still small) check: force a 128-lane tile so the multi-tile,
    # ragged-tail and clamped-index paths are exercised.
    c2, g2, n2 = 40, 6, 300
    x2 = jax.random.normal(kx2, (c2, n2), dtype=jnp.float32)
    pa2 = 0.01 * jax.random.normal(kp2, (c2, g2), dtype=jnp.float32)
    loss2 = jax.block_until_ready(
        group_assignment_loss(x2, pa2, max_tile_cols=128))
    ref2 = jax.block_until_ready(_reference_loss(x2, pa2))
    assert jnp.allclose(loss2, ref2, rtol=1e-4, atol=1e-4), (loss2, ref2)

    print("KERNEL_OK")
</pallas_src>

<mosaic_0001>
module attributes {stable_mosaic.version = 11 : i64} {
  func.func @_group_loss_kernel(%arg0: i32, %arg1: i32, %arg2: memref<32x8xf32, #tpu.memory_space<vmem>>, %arg3: memref<32x128xf32, #tpu.memory_space<vmem>>, %arg4: memref<1x8x8xf32, #tpu.memory_space<vmem>>, %arg5: memref<32x8xf32, #tpu.memory_space<vmem>>, %arg6: memref<8x8xf32, #tpu.memory_space<vmem>>) attributes {dimension_semantics = [#tpu.dimension_semantics<parallel>, #tpu.dimension_semantics<arbitrary>], iteration_bounds = array<i64: 1, 1>, scalar_prefetch = 0 : i64, scratch_operands = 2 : i64, tpu.core_type = #tpu.core_type<tc>, window_params = [{pipeline_mode = #tpu.pipeline_mode<synchronous>, transform_indices = @transform_0, window_bounds = array<i64: 32, 8>}, {transform_indices = @transform_1, window_bounds = array<i64: 32, 128>}, {transform_indices = @transform_2, window_bounds = array<i64: 1, 8, 8>}]} {
    %c0_i32 = arith.constant 0 : i32
    %0 = arith.cmpi eq, %arg1, %c0_i32 : i32
    %1 = arith.extui %0 : i1 to i32
    %c0_i32_0 = arith.constant 0 : i32
    %2 = arith.cmpi ne, %1, %c0_i32_0 : i32
    scf.if %2 {
      %c0_12 = arith.constant 0 : index
      %c0_13 = arith.constant 0 : index
      %22 = vector.load %arg2[%c0_12, %c0_13] : memref<32x8xf32, #tpu.memory_space<vmem>>, vector<32x8xf32>
      %23 = tpu.iota {dimensions = array<i32: 1>} : vector<32x8xi32>
      %c4_i32 = arith.constant 4 : i32
      %24 = vector.broadcast %c4_i32 : i32 to vector<32x8xi32>
      %25 = arith.cmpi slt, %23, %24 : vector<32x8xi32>
      %cst_14 = arith.constant 0xFF800000 : f32
      %26 = vector.broadcast %cst_14 : f32 to vector<32x8xf32>
      %27 = arith.select %25, %22, %26 : vector<32x8xi1>, vector<32x8xf32>
      %cst_15 = arith.constant dense<0xFF800000> : vector<32xf32>
      %28 = vector.multi_reduction <maximumf>, %27, %cst_15 [1] : vector<32x8xf32> to vector<32xf32>
      %29 = vector.shape_cast %28 : vector<32xf32> to vector<32x1xf32>
      %30 = vector.broadcast %29 : vector<32x1xf32> to vector<32x8xf32>
      %31 = arith.subf %22, %30 : vector<32x8xf32>
      %32 = math.exp %31 : vector<32x8xf32>
      %cst_16 = arith.constant 0.000000e+00 : f32
      %33 = vector.broadcast %cst_16 : f32 to vector<32x8xf32>
      %34 = arith.select %25, %32, %33 : vector<32x8xi1>, vector<32x8xf32>
      %cst_17 = arith.constant dense<0.000000e+00> : vector<32xf32>
      %35 = vector.multi_reduction <add>, %34, %cst_17 [1] : vector<32x8xf32> to vector<32xf32>
      %36 = vector.shape_cast %35 : vector<32xf32> to vector<32x1xf32>
      %37 = vector.broadcast %36 : vector<32x1xf32> to vector<32x8xf32>
      %38 = arith.divf %34, %37 : vector<32x8xf32>
      %cst_18 = arith.constant dense<0.000000e+00> : vector<8xf32>
      %39 = vector.multi_reduction <add>, %38, %cst_18 [0] : vector<32x8xf32> to vector<8xf32>
      %40 = vector.shape_cast %39 : vector<8xf32> to vector<1x8xf32>
      %cst_19 = arith.constant 0.000000e+00 : f32
      %41 = vector.broadcast %cst_19 : f32 to vector<1x8xf32>
      %42 = arith.cmpf ogt, %40, %41 : vector<1x8xf32>
      %cst_20 = arith.constant 1.000000e+00 : f32
      %43 = vector.broadcast %cst_20 : f32 to vector<1x8xf32>
      %44 = arith.select %42, %40, %43 : vector<1x8xi1>, vector<1x8xf32>
      %45 = vector.broadcast %44 : vector<1x8xf32> to vector<32x8xf32>
      %46 = arith.divf %38, %45 : vector<32x8xf32>
      %c0_21 = arith.constant 0 : index
      %c0_22 = arith.constant 0 : index
      %47 = vector.load %arg5[%c0_21, %c0_22] : memref<32x8xf32, #tpu.memory_space<vmem>>, vector<32x8xf32>
      tpu.vector_store %arg5[%c0_21, %c0_22], %46 {strides = array<i32>} : memref<32x8xf32, #tpu.memory_space<vmem>>, vector<32x8xf32>,
      %cst_23 = arith.constant 0.000000e+00 : f32
      %48 = vector.broadcast %cst_23 : f32 to vector<8x8xf32>
      %c0_24 = arith.constant 0 : index
      %c0_25 = arith.constant 0 : index
      %49 = vector.load %arg6[%c0_24, %c0_25] : memref<8x8xf32, #tpu.memory_space<vmem>>, vector<8x8xf32>
      tpu.vector_store %arg6[%c0_24, %c0_25], %48 {strides = array<i32>} : memref<8x8xf32, #tpu.memory_space<vmem>>, vector<8x8xf32>,
    } else {
    }
    %c0 = arith.constant 0 : index
    %c0_1 = arith.constant 0 : index
    %3 = vector.load %arg3[%c0, %c0_1] : memref<32x128xf32, #tpu.memory_space<vmem>>, vector<32x128xf32>
    %c0_2 = arith.constant 0 : index
    %c0_3 = arith.constant 0 : index
    %4 = vector.load %arg5[%c0_2, %c0_3] : memref<32x8xf32, #tpu.memory_space<vmem>>, vector<32x8xf32>
    %cst = arith.constant dense<0.000000e+00> : vector<8x128xf32>
    %5 = tpu.matmul %4, %3, %cst {dimension_numbers = #tpu.dot_dimension_numbers<[0], [0], [1], [1], [0, 1, 1, 1], [], []>} : vector<32x8xf32>, vector<32x128xf32>, vector<8x128xf32> -> vector<8x128xf32>
    %c1_i32 = arith.constant 1 : i32
    %6 = arith.muli %arg0, %c1_i32 : i32
    %7 = arith.addi %6, %arg1 : i32
    %c128_i32 = arith.constant 128 : i32
    %8 = arith.muli %7, %c128_i32 : i32
    %9 = tpu.iota {dimensions = array<i32: 1>} : vector<8x128xi32>
    %c16_i32 = arith.constant 16 : i32
    %10 = arith.subi %c16_i32, %8 : i32
    %11 = vector.broadcast %10 : i32 to vector<8x128xi32>
    %12 = arith.cmpi slt, %9, %11 : vector<8x128xi32>
    %cst_4 = arith.constant 0.000000e+00 : f32
    %13 = vector.broadcast %cst_4 : f32 to vector<8x128xf32>
    %14 = arith.select %12, %5, %13 : vector<8x128xi1>, vector<8x128xf32>
    %c0_5 = arith.constant 0 : index
    %c0_6 = arith.constant 0 : index
    %15 = vector.load %arg6[%c0_5, %c0_6] : memref<8x8xf32, #tpu.memory_space<vmem>>, vector<8x8xf32>
    %cst_7 = arith.constant dense<0.000000e+00> : vector<8x8xf32>
    %16 = tpu.matmul %14, %14, %cst_7 {dimension_numbers = #tpu.dot_dimension_numbers<[1], [1], [0], [0], [0, 0, 1, 0], [], []>} : vector<8x128xf32>, vector<8x128xf32>, vector<8x8xf32> -> vector<8x8xf32>
    %17 = arith.addf %15, %16 : vector<8x8xf32>
    %c0_8 = arith.constant 0 : index
    %c0_9 = arith.constant 0 : index
    %18 = vector.load %arg6[%c0_8, %c0_9] : memref<8x8xf32, #tpu.memory_space<vmem>>, vector<8x8xf32>
    tpu.vector_store %arg6[%c0_8, %c0_9], %17 {strides = array<i32>} : memref<8x8xf32, #tpu.memory_space<vmem>>, vector<8x8xf32>,
    %c0_i32_10 = arith.constant 0 : i32
    %19 = arith.cmpi eq, %arg1, %c0_i32_10 : i32
    %20 = arith.extui %19 : i1 to i32
    %c0_i32_11 = arith.constant 0 : i32
    %21 = arith.cmpi ne, %20, %c0_i32_11 : i32
    scf.if %21 {
      %c0_12 = arith.constant 0 : index
      %c0_13 = arith.constant 0 : index
      %22 = vector.load %arg6[%c0_12, %c0_13] : memref<8x8xf32, #tpu.memory_space<vmem>>, vector<8x8xf32>
      %c0_14 = arith.constant 0 : index
      %c0_15 = arith.constant 0 : index
      %c0_16 = arith.constant 0 : index
      %23 = vector.load %arg4[%c0_14, %c0_15, %c0_16] : memref<1x8x8xf32, #tpu.memory_space<vmem>>, vector<1x8x8xf32>
      %24 = vector.shape_cast %23 : vector<1x8x8xf32> to vector<8x8xf32>
      %25 = vector.shape_cast %22 : vector<8x8xf32> to vector<1x8x8xf32>
      tpu.vector_store %arg4[%c0_14, %c0_15, %c0_16], %25 {strides = array<i32>} : memref<1x8x8xf32, #tpu.memory_space<vmem>>, vector<1x8x8xf32>,
    } else {
    }
    return
  }
  func.func @transform_0(%arg0: i32, %arg1: i32) -> (i32, i32) {
    %c0_i32 = arith.constant 0 : i32
    %c0_i32_0 = arith.constant 0 : i32
    %c0_i32_1 = arith.constant 0 : i32
    return %c0_i32, %c0_i32_0 : i32, i32
  }
  func.func @transform_1(%arg0: i32, %arg1: i32) -> (i32, i32) {
    %c1_i32 = arith.constant 1 : i32
    %0 = arith.muli %arg0, %c1_i32 : i32
    %1 = arith.addi %0, %arg1 : i32
    %c0_i32 = arith.constant 0 : i32
    %c0_i32_0 = arith.constant 0 : i32
    return %c0_i32, %1 : i32, i32
  }
  func.func @transform_2(%arg0: i32, %arg1: i32) -> (i32, i32, i32) {
    %c0_i32 = arith.constant 0 : i32
    %c0_i32_0 = arith.constant 0 : i32
    %c0_i32_1 = arith.constant 0 : i32
    return %arg0, %c0_i32, %c0_i32_0 : i32, i32, i32
  }
}

</mosaic_0001>

<bundles_post_ra>
// kernel: group_assignment_loss.1
= control target key start
LH: loop header
LB: loop body
LE: loop exit
PB: predicated region body
PF: predicated region fallthrough
CT: control target
= control target key end

     0   :  { %v36_v0 = vlaneseq  ;;  %vm43_vm0 = vcmask 64512   ;;  %v381_v38 = vmov 0.0|0.0   ;;  %v382_v42 = vmov 0.0   ;;  %s465_s0 = inlined_call_operand.vmem [shape: f32[32,8], index: 0, kind: input, shape index: {}]   ;;  %s466_s1 = inlined_call_operand.vmem [shape: f32[32,16], index: 1, kind: input, shape index: {}]   ;;  %s467_s2 = inlined_call_operand.vmem [shape: f32[1,8,8], index: 2, kind: output, shape index: {}]  }
   0x1   :  { %v32_v1 = vld [vmem:[%s465_s0] sm:$0xff]  ;;  %v34_v3 = vld [vmem:[%s465_s0 + $0x10] sm:$0xff]  ;;  %v33_v4 = vld [vmem:[%s465_s0 + $0x8] sm:$0xff]  ;;  %354 = vmatprep.subr.bf16.mxu0 %v381_v38  ;;  %116 = vst.msk [vmem:[#allocation3] sm:$0xff] %vm43_vm0, %v382_v42  ;;  %vm383_vm2 = vmmov 0   ;;  %349 = vmatprep.subr.mxu1 %v382_v42  ;;  %vm157_vm4 = vcmask 261120  }
   0x2   :  { %v402_v2 = vand.u32 127, %v36_v0  ;;  %v35_v5 = vld [vmem:[%s465_s0 + $0x18] sm:$0xff]  ;;  %v117_v39 = vld [vmem:[%s466_s1] sm:$0xff]  ;;  %v118_v40 = vld [vmem:[%s466_s1 + $0x8] sm:$0xff]  ;;  %346 = vmatprep.mubr.msk.f32.mxu0 %vm383_vm2, %v382_v42  ;;  %351 = vmatprep.mubr.msk.f32.mxu1 %vm383_vm2, %v382_v42 }
   0x3   :  { %v119_v41 = vld [vmem:[%s466_s1 + $0x10] sm:$0xff]  ;;  %v355_v43 = vpack.c.bf16 %v118_v40, %v117_v39  ;;  %v120_v44 = vld [vmem:[%s466_s1 + $0x18] sm:$0xff] }
   0x4   :  { %vm38_vm1 = vcmp.lt.s32.totalorder %v402_v2, 4  ;;  %v358_v45 = vpack.c.bf16 %v120_v44, %v119_v41  ;;  %vm237_vm5 = vcmp.lt.s32.totalorder %v402_v2, 16 }
   0x5   :  { %v39_v6 = vsel %vm38_vm1, %v32_v1, -inf  ;;  %v41_v7 = vsel %vm38_vm1, %v34_v3, -inf  ;;  %v40_v8 = vsel %vm38_vm1, %v33_v4, -inf  ;;  %v42_v9 = vsel %vm38_vm1, %v35_v5, -inf  ;;  %356 = vmatpush3.bf16.msra.mxu0 %v355_v43 }
   0x6   :  { %v44_v10 = vsel %vm43_vm0, %v39_v6, -inf  ;;  %v50_v11 = vsel %vm43_vm0, %v41_v7, -inf  ;;  %v47_v12 = vsel %vm43_vm0, %v40_v8, -inf  ;;  %v53_v13 = vsel %vm43_vm0, %v42_v9, -inf  ;;  %357 = vmatprep.subr.bf16.mxu0 %v381_v38 }
   0x7   :  { %45 = vmax.xlane.f32.xlu0 %v44_v10  ;;  %51 = vmax.xlane.f32.xlu1 %v50_v11 }
   0x9   :  { %359 = vmatpush3.bf16.msra.mxu0 %v358_v45 }
   0xb   :  { %48 = vmax.xlane.f32.xlu0 %v47_v12  ;;  %54 = vmax.xlane.f32.xlu1 %v53_v13 }
  0x94   :  { %v46_v14 = vpop.xlane.xlu0 %45  ;;  %v52_v15 = vpop.xlane.xlu1 %51 }
  0x95   :  { %v56_v16 = vsub.f32 %v32_v1, %v46_v14  ;;  %v58_v17 = vsub.f32 %v34_v3, %v52_v15 }
  0x97   :  { %v60_v18 = vmul.f32 1.442695, %v56_v16  ;;  %v64_v19 = vmul.f32 1.442695, %v58_v17 }
  0x98   :  { %v49_v20 = vpop.xlane.xlu0 %48  ;;  %v55_v21 = vpop.xlane.xlu1 %54 }
  0x99   :  { %363 = vpow2.f32 %v60_v18  ;;  %v57_v22 = vsub.f32 %v33_v4, %v49_v20  ;;  %v59_v23 = vsub.f32 %v35_v5, %v55_v21  ;;  %v239_v21 = vld [vmem:[#allocation3] sm:$0xff] }
  0x9a   :  { %365 = vpow2.f32 %v64_v19 }
  0x9b   :  { %v62_v24 = vmul.f32 1.442695, %v57_v22  ;;  %v66_v25 = vmul.f32 1.442695, %v59_v23 }
  0x9d   :  { %367 = vpow2.f32 %v62_v24 }
  0x9e   :  { %369 = vpow2.f32 %v66_v25 }
  0xa3   :  { %v364_v26 = vpop.eup %363 }
  0xa4   :  { %v366_v27 = vpop.eup %365  ;;  %v68_v28 = vsel %vm38_vm1, %v364_v26, 0.0 }
  0xa5   :  { %v72_v29 = vsel %vm43_vm0, %v68_v28, 0.0  ;;  %v70_v30 = vsel %vm38_vm1, %v366_v27, 0.0 }
  0xa6   :  { %73 = vadd.xlane.f32.xlu0 %v72_v29  ;;  %v78_v32 = vsel %vm43_vm0, %v70_v30, 0.0 }
  0xa7   :  { %v368_v31 = vpop.eup %367 }
  0xa8   :  { %v370_v33 = vpop.eup %369  ;;  %v69_v34 = vsel %vm38_vm1, %v368_v31, 0.0 }
  0xa9   :  { %v75_v35 = vsel %vm43_vm0, %v69_v34, 0.0  ;;  %v71_v36 = vsel %vm38_vm1, %v370_v33, 0.0 }
  0xaa   :  { %79 = vadd.xlane.f32.xlu0 %v78_v32  ;;  %76 = vadd.xlane.f32.xlu1 %v75_v35  ;;  %v81_v37 = vsel %vm43_vm0, %v71_v36, 0.0 }
  0xae   :  { %82 = vadd.xlane.f32.xlu1 %v81_v37 }
 0x133   :  { %v74_v46 = vpop.xlane.xlu0 %73 }
 0x134   :  { %371 = vrcp.f32 %v74_v46 }
 0x137   :  { %v77_v47 = vpop.xlane.xlu1 %76  ;;  %v80_v48 = vpop.xlane.xlu0 %79 }
 0x138   :  { %373 = vrcp.f32 %v77_v47 }
 0x139   :  { %375 = vrcp.f32 %v80_v48 }
 0x13b   :  { %v83_v49 = vpop.xlane.xlu1 %82 }
 0x13c   :  { %377 = vrcp.f32 %v83_v49 }
 0x13e   :  { %v372_v50 = vpop.eup %371 }
 0x13f   :  { %v85_v51 = vmul.f32 %v372_v50, %v68_v28 }
 0x141   :  { %v92_v56 = vsel %vm43_vm0, %v85_v51, 0.0 }
 0x142   :  { %v374_v52 = vpop.eup %373 }
 0x143   :  { %v376_v53 = vpop.eup %375  ;;  %v87_v54 = vmul.f32 %v374_v52, %v69_v34 }
 0x144   :  { %v89_v55 = vmul.f32 %v376_v53, %v70_v30 }
 0x145   :  { %v93_v57 = vsel %vm43_vm0, %v87_v54, 0.0 }
 0x146   :  { %v378_v58 = vpop.eup %377  ;;  %v94_v59 = vadd.f32 %v93_v57, %v92_v56  ;;  %v95_v60 = vsel %vm43_vm0, %v89_v55, 0.0 }
 0x147   :  { %v91_v61 = vmul.f32 %v378_v58, %v71_v36 }
 0x148   :  { %v96_v62 = vadd.f32 %v95_v60, %v94_v59 }
 0x149   :  { %v97_v63 = vsel %vm43_vm0, %v91_v61, 0.0 }
 0x14a   :  { %v98_v0 = vadd.f32 %v97_v63, %v96_v62 }
 0x14c   :  { %v99_v1 = vrot.slane %v98_v0, 4 }
 0x14e   :  { %v100_v3 = vadd.f32 %v99_v1, %v98_v0 }
 0x150   :  { %v101_v4 = vrot.slane %v100_v3, 2 }
 0x152   :  { %v102_v5 = vadd.f32 %v101_v4, %v100_v3 }
 0x154   :  { %v103_v6 = vrot.slane %v102_v5, 1 }
 0x156   :  { %v104_v7 = vadd.f32 %v103_v6, %v102_v5 }
 0x158   :  { %vm105_vm3 = vcmp.gt.f32.partialorder %v104_v7, 0.0 }
 0x159   :  { %v106_v8 = vsel %vm105_vm3, %v104_v7, 1.0 }
 0x15a   :  { %379 = vrcp.f32 %v106_v8 }
 0x164   :  { %v380_v9 = vpop.eup %379 }
 0x165   :  { %v111_v10 = vmul.f32 %v380_v9, %v91_v61  ;;  %v108_v11 = vmul.f32 %v380_v9, %v85_v51  ;;  %v109_v12 = vmul.f32 %v380_v9, %v87_v54  ;;  %v110_v13 = vmul.f32 %v380_v9, %v89_v55 }
 0x167   :  { %115 = vst.msk [vmem:[#allocation2 + $0x18] sm:$0xff] %vm43_vm0, %v111_v10  ;;  %112 = vst.msk [vmem:[#allocation2] sm:$0xff] %vm43_vm0, %v108_v11 }
 0x168   :  { %113 = vst.msk [vmem:[#allocation2 + $0x8] sm:$0xff] %vm43_vm0, %v109_v12  ;;  %114 = vst.msk [vmem:[#allocation2 + $0x10] sm:$0xff] %vm43_vm0, %v110_v13 }
 0x16e   :  { %v121_v14 = vld [vmem:[#allocation2] sm:$0xff]  ;;  %v124_v17 = vld [vmem:[#allocation2 + $0x18] sm:$0xff] }
 0x16f   :  { %125 = vxpose.xlu0.b32.start [1/4] (short) (narrow) %v121_v14, 8  ;;  %v122_v15 = vld [vmem:[#allocation2 + $0x8] sm:$0xff]  ;;  %v123_v16 = vld [vmem:[#allocation2 + $0x10] sm:$0xff] }
 0x173   :  { %126 = vxpose.xlu0.b32.cont [2/4] (short) (narrow) %v122_v15, 8 }
 0x177   :  { %127 = vxpose.xlu0.b32.cont [3/4] (short) (narrow) %v123_v16, 8 }
 0x17b   :  { %128 = vxpose.xlu0.b32.end [4/4] (short) (narrow) %v124_v17, 8 }
 0x1ef   :  { %v141_v18 = vpop.trf.xlu0 }
 0x1f0   :  { %347 = vmatmul.mubr.msk.f32.vlgmr.msra.gmra.mrb[0].mxu0 %vm157_vm4, %v141_v18 }
 0x2c3   :  { %v227_v19 = vpop.f32.mrb[0].mxu0 }
 0x2c4   :  { %v348_v20 = vpop.f32.mrb[1].mxu0  ;;  %350 = vmatpush3.xpose.msk.msra.mxu1 %vm237_vm5, %v227_v19 }
 0x2c7   :  { %352 = vmatmul.mubr.msk.f32.vlgmr.msra.gmra.mrb[0].mxu1 %vm237_vm5, %v227_v19 }
 0x39a   :  { %v306_v22 = vpop.f32.mrb[0].mxu1 }
 0x39b   :  { %v310_v23 = vadd.f32 %v306_v22, %v239_v21  ;;  %v353_v24 = vpop.f32.mrb[1].mxu1 }
 0x39d   :  { %312 = vst.msk [vmem:[#allocation3] sm:$0xff] %vm43_vm0, %v310_v23 }
 0x3a4   :  { %v316_v25 = vld [vmem:[#allocation3] sm:$0xff] }
 0x3a5   :  { %317 = vst.msk [vmem:[%s467_s2] sm:$0xff] %vm43_vm0, %v316_v25 }

</bundles_post_ra>
